<compile_context>
chip_gen: v7x
topology: tpu7x:2x2x1
jax: 0.10.0
libtpu: 0.0.40
codegen_flags: <defaults>
</compile_context>

<pallas_src>
import functools

import jax
import jax.numpy as jnp
from jax.experimental import pallas as pl
from jax.experimental.pallas import tpu as pltpu

_SMALL_BATCH = 256  # below this, use a single exact-size tile (no split / padding waste)


def mlp_kernel(x_ref,
               w1_ref, b1_ref,
               w2_ref, b2_ref,
               w3_ref, b3_ref,
               w4_ref, b4_ref,
               w5_ref, b5_ref,
               o_ref):
    """Fused 5-layer MLP.

    bf16 MXU matmuls with f32 accumulation; f32 bias + ReLU.  fc5 (16->1) is a
    VPU multiply + lane reduction so the output stays a narrow (bb, 1) column
    instead of a 128-wide padded slab.
    """
    # f32 -> bf16 cast done in-kernel (VPU, hidden under the input DMA).
    h = x_ref[...].astype(jnp.bfloat16)                                    # (bb, D)

    h = jnp.dot(h, w1_ref[...], preferred_element_type=jnp.float32) + b1_ref[...]
    h = jnp.maximum(h, 0.0).astype(jnp.bfloat16)   # relu; dropout = identity (eval)

    h = jnp.dot(h, w2_ref[...], preferred_element_type=jnp.float32) + b2_ref[...]
    h = jnp.maximum(h, 0.0).astype(jnp.bfloat16)

    h = jnp.dot(h, w3_ref[...], preferred_element_type=jnp.float32) + b3_ref[...]
    h = jnp.maximum(h, 0.0).astype(jnp.bfloat16)

    h = jnp.dot(h, w4_ref[...], preferred_element_type=jnp.float32) + b4_ref[...]
    h = jnp.maximum(h, 0.0)                        # keep f32: feeds a VPU reduction

    # fc5: (bb,16) * (1,16) -> sum over lanes -> (bb,1).  No 128-wide pad.
    out = jnp.sum(h * w5_ref[...], axis=-1, keepdims=True) + b5_ref[...]
    o_ref[...] = out.astype(o_ref.dtype)


def _round_up(n, m):
    return ((n + m - 1) // m) * m


def prepare_params(params):
    """One-time conversion of PyTorch-style params for the kernel.

    Weights of fc1..fc4 -> bf16 (MXU feeds); biases -> f32; fc5 weight is
    reshaped to a (1, 16) f32 row for the in-kernel VPU reduction.
    Call once, outside the per-forward jitted path.
    """
    (w1, b1), (w2, b2), (w3, b3), (w4, b4), (w5, b5) = params
    return (
        w1.astype(jnp.bfloat16), b1.astype(jnp.float32),
        w2.astype(jnp.bfloat16), b2.astype(jnp.float32),
        w3.astype(jnp.bfloat16), b3.astype(jnp.float32),
        w4.astype(jnp.bfloat16), b4.astype(jnp.float32),
        jnp.reshape(w5.astype(jnp.float32), (1, -1)),   # (16,1) -> (1,16)
        jnp.reshape(b5.astype(jnp.float32), (1, 1)),
    )


@functools.partial(jax.jit, static_argnames=("block_b",))
def mlp_forward(x, prepped, block_b=2048):
    """x: (B, input_dim) float32.  prepped: output of prepare_params()."""
    B, D = x.shape
    (w1b, b1f, w2b, b2f, w3b, b3f, w4b, b4f, w5row, b5f) = prepped

    # Batch tile: multiple of 16 (bf16 native sublane tile).  Tiny batches get
    # a single exact tile; larger batches split into >= 2 tiles (capped at
    # block_b) so v7x's two TensorCores both get work under "parallel".
    b16 = _round_up(B, 16)
    if b16 <= _SMALL_BATCH:
        bb = b16
    else:
        bb = min(block_b, _round_up(pl.cdiv(b16, 2), 16))
    B_pad = _round_up(B, bb)
    n_blocks = B_pad // bb

    # Only pad the ragged tail (no wrapper-side dtype cast pass).  Padded rows
    # produce garbage through bias+ReLU; they are sliced away below and the
    # kernel never reduces over the batch, so this is safe.
    if B_pad != B:
        x = jnp.pad(x, ((0, B_pad - B), (0, 0)))

    def full_spec(arr):
        # Small parameter, fully resident in VMEM for every grid step.
        return pl.BlockSpec(arr.shape, lambda i: (0, 0))

    out = pl.pallas_call(
        mlp_kernel,
        out_shape=jax.ShapeDtypeStruct((B_pad, 1), jnp.float32),
        grid_spec=pltpu.PrefetchScalarGridSpec(
            num_scalar_prefetch=0,
            grid=(n_blocks,),
            in_specs=[
                pl.BlockSpec((bb, D), lambda i: (i, 0)),   # x tile over batch
                full_spec(w1b), full_spec(b1f),
                full_spec(w2b), full_spec(b2f),
                full_spec(w3b), full_spec(b3f),
                full_spec(w4b), full_spec(b4f),
                full_spec(w5row), full_spec(b5f),
            ],
            out_specs=pl.BlockSpec((bb, 1), lambda i: (i, 0)),
        ),
        compiler_params=pltpu.CompilerParams(
            dimension_semantics=("parallel",),
            # ~0.5-8 MiB of double-buffered tiles at bb=2048 for realistic D;
            # 32 MiB is comfortably within v5e/v6e/v7x scoped VMEM.
            vmem_limit_bytes=32 * 1024 * 1024,
        ),
    )(x, w1b, b1f, w2b, b2f, w3b, b3f, w4b, b4f, w5row, b5f)

    return out[:B, :]


def init_params(key, input_dim):
    """Deterministic init mimicking nn.Linear's uniform(-1/sqrt(in), 1/sqrt(in))."""
    dims = [input_dim, 128, 64, 32, 16, 1]
    params = []
    for d_in, d_out in zip(dims[:-1], dims[1:]):
        key, kw, kb = jax.random.split(key, 3)
        bound = 1.0 / (d_in ** 0.5)
        W = jax.random.uniform(kw, (d_in, d_out), jnp.float32, -bound, bound)
        b = jax.random.uniform(kb, (1, d_out), jnp.float32, -bound, bound)
        params.append((W, b))
    return params


if __name__ == "__main__":
    key = jax.random.PRNGKey(0)
    key, kx = jax.random.split(key)

    input_dim = 32
    batch = 8
    x = jax.random.normal(kx, (batch, input_dim), jnp.float32)

    params = init_params(key, input_dim)
    prepped = prepare_params(params)     # one-time weight conversion

    out = mlp_forward(x, prepped)
    out = jax.block_until_ready(out)

    # Pure-JAX reference mirroring the kernel's numerics:
    #   bf16-rounded input and fc1..fc4 weights, f32 accumulation, f32 bias +
    #   ReLU; activations re-rounded to bf16 between MXU layers (fc1..fc3);
    #   fc4 output kept f32 and fc5 applied in f32 (eval-mode dropout = identity).
    ref = x.astype(jnp.bfloat16).astype(jnp.float32)
    for i, (W, b) in enumerate(params[:4]):
        Wb = W.astype(jnp.bfloat16).astype(jnp.float32)
        ref = jnp.dot(ref, Wb, precision=jax.lax.Precision.HIGHEST) + b
        ref = jnp.maximum(ref, 0.0)
        if i < 3:
            ref = ref.astype(jnp.bfloat16).astype(jnp.float32)
    W5, b5 = params[4]
    ref = jnp.dot(ref, W5, precision=jax.lax.Precision.HIGHEST) + b5

    assert out.shape == (batch, 1)
    assert jnp.allclose(out, ref, atol=2e-3, rtol=2e-3)

    print("KERNEL_OK")
</pallas_src>

<mosaic_0001>
module attributes {stable_mosaic.version = 11 : i64} {
  func.func @mlp_kernel(%arg0: i32, %arg1: memref<16x32xf32, #tpu.memory_space<vmem>>, %arg2: memref<32x128xbf16, #tpu.memory_space<vmem>>, %arg3: memref<1x128xf32, #tpu.memory_space<vmem>>, %arg4: memref<128x64xbf16, #tpu.memory_space<vmem>>, %arg5: memref<1x64xf32, #tpu.memory_space<vmem>>, %arg6: memref<64x32xbf16, #tpu.memory_space<vmem>>, %arg7: memref<1x32xf32, #tpu.memory_space<vmem>>, %arg8: memref<32x16xbf16, #tpu.memory_space<vmem>>, %arg9: memref<1x16xf32, #tpu.memory_space<vmem>>, %arg10: memref<1x16xf32, #tpu.memory_space<vmem>>, %arg11: memref<1x1xf32, #tpu.memory_space<vmem>>, %arg12: memref<16x1xf32, #tpu.memory_space<vmem>>) attributes {dimension_semantics = [#tpu.dimension_semantics<parallel>], iteration_bounds = array<i64: 1>, scalar_prefetch = 0 : i64, scratch_operands = 0 : i64, tpu.core_type = #tpu.core_type<tc>, window_params = [{transform_indices = @transform_0, window_bounds = array<i64: 16, 32>}, {pipeline_mode = #tpu.pipeline_mode<synchronous>, transform_indices = @transform_1, window_bounds = array<i64: 32, 128>}, {pipeline_mode = #tpu.pipeline_mode<synchronous>, transform_indices = @transform_2, window_bounds = array<i64: 1, 128>}, {pipeline_mode = #tpu.pipeline_mode<synchronous>, transform_indices = @transform_3, window_bounds = array<i64: 128, 64>}, {pipeline_mode = #tpu.pipeline_mode<synchronous>, transform_indices = @transform_4, window_bounds = array<i64: 1, 64>}, {pipeline_mode = #tpu.pipeline_mode<synchronous>, transform_indices = @transform_5, window_bounds = array<i64: 64, 32>}, {pipeline_mode = #tpu.pipeline_mode<synchronous>, transform_indices = @transform_6, window_bounds = array<i64: 1, 32>}, {pipeline_mode = #tpu.pipeline_mode<synchronous>, transform_indices = @transform_7, window_bounds = array<i64: 32, 16>}, {pipeline_mode = #tpu.pipeline_mode<synchronous>, transform_indices = @transform_8, window_bounds = array<i64: 1, 16>}, {pipeline_mode = #tpu.pipeline_mode<synchronous>, transform_indices = @transform_9, window_bounds = array<i64: 1, 16>}, {pipeline_mode = #tpu.pipeline_mode<synchronous>, transform_indices = @transform_10, window_bounds = array<i64: 1, 1>}, {transform_indices = @transform_11, window_bounds = array<i64: 16, 1>}]} {
    %c0 = arith.constant 0 : index
    %c0_0 = arith.constant 0 : index
    %0 = vector.load %arg1[%c0, %c0_0] : memref<16x32xf32, #tpu.memory_space<vmem>>, vector<16x32xf32>
    %1 = arith.truncf %0 : vector<16x32xf32> to vector<16x32xbf16>
    %c0_1 = arith.constant 0 : index
    %c0_2 = arith.constant 0 : index
    %2 = vector.load %arg2[%c0_1, %c0_2] : memref<32x128xbf16, #tpu.memory_space<vmem>>, vector<32x128xbf16>
    %cst = arith.constant dense<0.000000e+00> : vector<16x128xf32>
    %3 = tpu.matmul %1, %2, %cst {dimension_numbers = #tpu.dot_dimension_numbers<[1], [0], [0], [1], [0, 0, 1, 1], [], []>} : vector<16x32xbf16>, vector<32x128xbf16>, vector<16x128xf32> -> vector<16x128xf32>
    %c0_3 = arith.constant 0 : index
    %c0_4 = arith.constant 0 : index
    %4 = vector.load %arg3[%c0_3, %c0_4] : memref<1x128xf32, #tpu.memory_space<vmem>>, vector<1x128xf32>
    %5 = vector.broadcast %4 : vector<1x128xf32> to vector<16x128xf32>
    %6 = arith.addf %3, %5 : vector<16x128xf32>
    %cst_5 = arith.constant 0.000000e+00 : f32
    %7 = vector.broadcast %cst_5 : f32 to vector<16x128xf32>
    %8 = arith.maximumf %6, %7 : vector<16x128xf32>
    %9 = arith.truncf %8 : vector<16x128xf32> to vector<16x128xbf16>
    %c0_6 = arith.constant 0 : index
    %c0_7 = arith.constant 0 : index
    %10 = vector.load %arg4[%c0_6, %c0_7] : memref<128x64xbf16, #tpu.memory_space<vmem>>, vector<128x64xbf16>
    %cst_8 = arith.constant dense<0.000000e+00> : vector<16x64xf32>
    %11 = tpu.matmul %9, %10, %cst_8 {dimension_numbers = #tpu.dot_dimension_numbers<[1], [0], [0], [1], [0, 0, 1, 1], [], []>} : vector<16x128xbf16>, vector<128x64xbf16>, vector<16x64xf32> -> vector<16x64xf32>
    %c0_9 = arith.constant 0 : index
    %c0_10 = arith.constant 0 : index
    %12 = vector.load %arg5[%c0_9, %c0_10] : memref<1x64xf32, #tpu.memory_space<vmem>>, vector<1x64xf32>
    %13 = vector.broadcast %12 : vector<1x64xf32> to vector<16x64xf32>
    %14 = arith.addf %11, %13 : vector<16x64xf32>
    %cst_11 = arith.constant 0.000000e+00 : f32
    %15 = vector.broadcast %cst_11 : f32 to vector<16x64xf32>
    %16 = arith.maximumf %14, %15 : vector<16x64xf32>
    %17 = arith.truncf %16 : vector<16x64xf32> to vector<16x64xbf16>
    %c0_12 = arith.constant 0 : index
    %c0_13 = arith.constant 0 : index
    %18 = vector.load %arg6[%c0_12, %c0_13] : memref<64x32xbf16, #tpu.memory_space<vmem>>, vector<64x32xbf16>
    %cst_14 = arith.constant dense<0.000000e+00> : vector<16x32xf32>
    %19 = tpu.matmul %17, %18, %cst_14 {dimension_numbers = #tpu.dot_dimension_numbers<[1], [0], [0], [1], [0, 0, 1, 1], [], []>} : vector<16x64xbf16>, vector<64x32xbf16>, vector<16x32xf32> -> vector<16x32xf32>
    %c0_15 = arith.constant 0 : index
    %c0_16 = arith.constant 0 : index
    %20 = vector.load %arg7[%c0_15, %c0_16] : memref<1x32xf32, #tpu.memory_space<vmem>>, vector<1x32xf32>
    %21 = vector.broadcast %20 : vector<1x32xf32> to vector<16x32xf32>
    %22 = arith.addf %19, %21 : vector<16x32xf32>
    %cst_17 = arith.constant 0.000000e+00 : f32
    %23 = vector.broadcast %cst_17 : f32 to vector<16x32xf32>
    %24 = arith.maximumf %22, %23 : vector<16x32xf32>
    %25 = arith.truncf %24 : vector<16x32xf32> to vector<16x32xbf16>
    %c0_18 = arith.constant 0 : index
    %c0_19 = arith.constant 0 : index
    %26 = vector.load %arg8[%c0_18, %c0_19] : memref<32x16xbf16, #tpu.memory_space<vmem>>, vector<32x16xbf16>
    %cst_20 = arith.constant dense<0.000000e+00> : vector<16x16xf32>
    %27 = tpu.matmul %25, %26, %cst_20 {dimension_numbers = #tpu.dot_dimension_numbers<[1], [0], [0], [1], [0, 0, 1, 1], [], []>} : vector<16x32xbf16>, vector<32x16xbf16>, vector<16x16xf32> -> vector<16x16xf32>
    %c0_21 = arith.constant 0 : index
    %c0_22 = arith.constant 0 : index
    %28 = vector.load %arg9[%c0_21, %c0_22] : memref<1x16xf32, #tpu.memory_space<vmem>>, vector<1x16xf32>
    %29 = vector.broadcast %28 : vector<1x16xf32> to vector<16x16xf32>
    %30 = arith.addf %27, %29 : vector<16x16xf32>
    %cst_23 = arith.constant 0.000000e+00 : f32
    %31 = vector.broadcast %cst_23 : f32 to vector<16x16xf32>
    %32 = arith.maximumf %30, %31 : vector<16x16xf32>
    %c0_24 = arith.constant 0 : index
    %c0_25 = arith.constant 0 : index
    %33 = vector.load %arg10[%c0_24, %c0_25] : memref<1x16xf32, #tpu.memory_space<vmem>>, vector<1x16xf32>
    %34 = vector.broadcast %33 : vector<1x16xf32> to vector<16x16xf32>
    %35 = arith.mulf %32, %34 : vector<16x16xf32>
    %cst_26 = arith.constant dense<0.000000e+00> : vector<16xf32>
    %36 = vector.multi_reduction <add>, %35, %cst_26 [1] : vector<16x16xf32> to vector<16xf32>
    %37 = vector.shape_cast %36 : vector<16xf32> to vector<16x1xf32>
    %c0_27 = arith.constant 0 : index
    %c0_28 = arith.constant 0 : index
    %38 = vector.load %arg11[%c0_27, %c0_28] : memref<1x1xf32, #tpu.memory_space<vmem>>, vector<1x1xf32>
    %39 = vector.broadcast %38 : vector<1x1xf32> to vector<16x1xf32>
    %40 = arith.addf %37, %39 : vector<16x1xf32>
    %c0_29 = arith.constant 0 : index
    %c0_30 = arith.constant 0 : index
    %41 = vector.load %arg12[%c0_29, %c0_30] : memref<16x1xf32, #tpu.memory_space<vmem>>, vector<16x1xf32>
    tpu.vector_store %arg12[%c0_29, %c0_30], %40 {strides = array<i32>} : memref<16x1xf32, #tpu.memory_space<vmem>>, vector<16x1xf32>,
    return
  }
  func.func @transform_0(%arg0: i32) -> (i32, i32) {
    %c0_i32 = arith.constant 0 : i32
    %c0_i32_0 = arith.constant 0 : i32
    return %arg0, %c0_i32 : i32, i32
  }
  func.func @transform_1(%arg0: i32) -> (i32, i32) {
    %c0_i32 = arith.constant 0 : i32
    %c0_i32_0 = arith.constant 0 : i32
    %c0_i32_1 = arith.constant 0 : i32
    return %c0_i32, %c0_i32_0 : i32, i32
  }
  func.func @transform_2(%arg0: i32) -> (i32, i32) {
    %c0_i32 = arith.constant 0 : i32
    %c0_i32_0 = arith.constant 0 : i32
    %c0_i32_1 = arith.constant 0 : i32
    return %c0_i32, %c0_i32_0 : i32, i32
  }
  func.func @transform_3(%arg0: i32) -> (i32, i32) {
    %c0_i32 = arith.constant 0 : i32
    %c0_i32_0 = arith.constant 0 : i32
    %c0_i32_1 = arith.constant 0 : i32
    return %c0_i32, %c0_i32_0 : i32, i32
  }
  func.func @transform_4(%arg0: i32) -> (i32, i32) {
    %c0_i32 = arith.constant 0 : i32
    %c0_i32_0 = arith.constant 0 : i32
    %c0_i32_1 = arith.constant 0 : i32
    return %c0_i32, %c0_i32_0 : i32, i32
  }
  func.func @transform_5(%arg0: i32) -> (i32, i32) {
    %c0_i32 = arith.constant 0 : i32
    %c0_i32_0 = arith.constant 0 : i32
    %c0_i32_1 = arith.constant 0 : i32
    return %c0_i32, %c0_i32_0 : i32, i32
  }
  func.func @transform_6(%arg0: i32) -> (i32, i32) {
    %c0_i32 = arith.constant 0 : i32
    %c0_i32_0 = arith.constant 0 : i32
    %c0_i32_1 = arith.constant 0 : i32
    return %c0_i32, %c0_i32_0 : i32, i32
  }
  func.func @transform_7(%arg0: i32) -> (i32, i32) {
    %c0_i32 = arith.constant 0 : i32
    %c0_i32_0 = arith.constant 0 : i32
    %c0_i32_1 = arith.constant 0 : i32
    return %c0_i32, %c0_i32_0 : i32, i32
  }
  func.func @transform_8(%arg0: i32) -> (i32, i32) {
    %c0_i32 = arith.constant 0 : i32
    %c0_i32_0 = arith.constant 0 : i32
    %c0_i32_1 = arith.constant 0 : i32
    return %c0_i32, %c0_i32_0 : i32, i32
  }
  func.func @transform_9(%arg0: i32) -> (i32, i32) {
    %c0_i32 = arith.constant 0 : i32
    %c0_i32_0 = arith.constant 0 : i32
    %c0_i32_1 = arith.constant 0 : i32
    return %c0_i32, %c0_i32_0 : i32, i32
  }
  func.func @transform_10(%arg0: i32) -> (i32, i32) {
    %c0_i32 = arith.constant 0 : i32
    %c0_i32_0 = arith.constant 0 : i32
    %c0_i32_1 = arith.constant 0 : i32
    return %c0_i32, %c0_i32_0 : i32, i32
  }
  func.func @transform_11(%arg0: i32) -> (i32, i32) {
    %c0_i32 = arith.constant 0 : i32
    %c0_i32_0 = arith.constant 0 : i32
    return %arg0, %c0_i32 : i32, i32
  }
}

</mosaic_0001>

<bundles_post_ra>
// kernel: mlp_forward.1
= control target key start
LH: loop header
LB: loop body
LE: loop exit
PB: predicated region body
PF: predicated region fallthrough
CT: control target
= control target key end

     0   :  { %v529_v0 = vmov 0.0   ;;  %vm530_vm0 = vmmov 0   ;;  %vm67_vm1 = vcmask 261120   ;;  %vm269_vm2 = vcmask 523264   ;;  %s695_s1 = inlined_call_operand.vmem [shape: bf16[32,128], index: 1, kind: input, shape index: {}]   ;;  %s696_s0 = inlined_call_operand.vmem [shape: f32[16,32], index: 0, kind: input, shape index: {}]   ;;  %s697_s3 = inlined_call_operand.vmem [shape: bf16[128,64], index: 3, kind: input, shape index: {}]   ;;  %s698_s5 = inlined_call_operand.vmem [shape: bf16[64,32], index: 5, kind: input, shape index: {}]   ;;  %s699_s2 = inlined_call_operand.vmem [shape: f32[1,128], index: 2, kind: input, shape index: {}]   ;;  %s700_s4 = inlined_call_operand.vmem [shape: f32[1,64], index: 4, kind: input, shape index: {}]   ;;  %s701_s7 = inlined_call_operand.vmem [shape: bf16[32,16], index: 7, kind: input, shape index: {}]   ;;  %s702_s6 = inlined_call_operand.vmem [shape: f32[1,32], index: 6, kind: input, shape index: {}]   ;;  %s703_s10 = inlined_call_operand.<no memory space> [shape: f32[1,1], index: 10, kind: input, shape index: {}]   ;;  %s704_s8 = inlined_call_operand.vmem [shape: f32[1,16], index: 8, kind: input, shape index: {}]   ;;  %s705_s9 = inlined_call_operand.vmem [shape: f32[1,16], index: 9, kind: input, shape index: {}]   ;;  %s706_s11 = inlined_call_operand.vmem [shape: f32[16,1], index: 11, kind: output, shape index: {}]  }
   0x1   :  { %463 = vmatprep.subr.bf16.mxu0 %v529_v0  ;;  %v513_v1 = vld [vmem:[%s695_s1] sm:$0xff]   ;;  %467 = vmatprep.mubr.msk.bf16.mxu0 %vm530_vm0, %v529_v0  ;;  %v514_v2 = vld [vmem:[%s695_s1 + $0x8] sm:$0xff]   ;;  %v517_v8 = vld [vmem:[%s697_s3 + $0x10] sm:$0xff]   ;;  %v16_v50 = vstv %s703_s10  ;;  %vm395_vm3 = vcmask 130048   ;;  %vm411_vm4 = vcmask 7168  }
   0x2   :  { %471 = vmatprep.subr.bf16.mxu1 %v529_v0  ;;  %487 = vmatprep.mubr.msk.bf16.mxu1 %vm530_vm0, %v529_v0  ;;  %v41_v3 = vld [vmem:[%s696_s0] sm:$0xff]  ;;  %v42_v4 = vld [vmem:[%s696_s0 + $0x8] sm:$0xff]  ;;  %v518_v9 = vld [vmem:[%s697_s3 + $0x18] sm:$0xff]   ;;  %17 = vst [vmem:[#allocation2] sm:$0x1] %v16_v50 }
   0x3   :  { %464 = vmatpush3.bf16.msra.mxu0 %v513_v1  ;;  %v515_v5 = vld [vmem:[%s697_s3] sm:$0xff]   ;;  %v43_v6 = vpack.c.bf16 %v42_v4, %v41_v3  ;;  %v516_v7 = vld [vmem:[%s697_s3 + $0x8] sm:$0xff]   ;;  %v521_v12 = vld [vmem:[%s697_s3 + $0x30] sm:$0xff]  }
   0x4   :  { %465 = vmatprep.subr.bf16.mxu0 %v529_v0  ;;  %472 = vmatpush3.bf16.msra.mxu1 %v515_v5  ;;  %v519_v10 = vld [vmem:[%s697_s3 + $0x20] sm:$0xff]   ;;  %v520_v11 = vld [vmem:[%s697_s3 + $0x28] sm:$0xff]   ;;  %v522_v13 = vld [vmem:[%s697_s3 + $0x38] sm:$0xff]  }
   0x5   :  { %473 = vmatprep.subr.bf16.mxu1 %v529_v0  ;;  %v523_v14 = vld [vmem:[%s698_s5] sm:$0xff]   ;;  %v524_v15 = vld [vmem:[%s698_s5 + $0x8] sm:$0xff]   ;;  %v525_v26 = vld [vmem:[%s698_s5 + $0x10] sm:$0xff]  }
   0x6   :  { %v418_v16 = vld [vmem:[%s699_s2] ss:$0 sm:$0xff]  ;;  %v526_v27 = vld [vmem:[%s698_s5 + $0x18] sm:$0xff]   ;;  %v528_v39 = vld [vmem:[%s701_s7 + $0x8] sm:$0xff]  }
   0x7   :  { %466 = vmatpush3.bf16.msra.mxu0 %v514_v2  ;;  %v422_v28 = vld [vmem:[%s700_s4] ss:$0 sm:$0xff] }
   0x8   :  { %491 = vmatprep.subr.bf16.mxu0 %v529_v0  ;;  %474 = vmatpush3.bf16.msra.mxu1 %v516_v7  ;;  %v527_v38 = vld [vmem:[%s701_s7] sm:$0xff]  }
   0x9   :  { %475 = vmatprep.subr.bf16.mxu1 %v529_v0  ;;  %v431_v40 = vld [vmem:[%s702_s6] ss:$0 sm:$0xff] }
   0xa   :  { %468 = vmatmul.mubr.msk.bf16.vlgmr.msra.gmra.mrb[0].mxu0 %vm67_vm1, %v43_v6  ;;  %v437_v51 = vld [vmem:[%s704_s8] ss:$0 sm:$0xff] }
   0xb   :  { %499 = vmatprep.mubr.msk.bf16.mxu0 %vm530_vm0, %v529_v0  ;;  %492 = vmatpush3.bf16.msra.mxu0 %v523_v14  ;;  %v441_v56 = vld [vmem:[%s705_s9] ss:$0 sm:$0xff] }
   0xc   :  { %476 = vmatpush3.bf16.msra.mxu1 %v517_v8  ;;  %493 = vmatprep.subr.bf16.mxu0 %v529_v0  ;;  %v442_v1 = vld [vmem:[#allocation2] ss:$0 sm:$0xff] }
   0xd   :  { %477 = vmatprep.subr.bf16.mxu1 %v529_v0 }
   0xf   :  { %494 = vmatpush3.bf16.msra.mxu0 %v524_v15 }
  0x10   :  { %478 = vmatpush3.bf16.msra.mxu1 %v518_v9  ;;  %495 = vmatprep.subr.bf16.mxu0 %v529_v0 }
  0x11   :  { %479 = vmatprep.subr.bf16.mxu1 %v529_v0 }
  0x13   :  { %496 = vmatpush3.bf16.msra.mxu0 %v525_v26 }
  0x14   :  { %480 = vmatpush3.bf16.msra.mxu1 %v519_v10  ;;  %497 = vmatprep.subr.bf16.mxu0 %v529_v0 }
  0x15   :  { %481 = vmatprep.subr.bf16.mxu1 %v529_v0 }
  0x17   :  { %498 = vmatpush3.bf16.msra.mxu0 %v526_v27 }
  0x18   :  { %482 = vmatpush3.bf16.msra.mxu1 %v520_v11  ;;  %503 = vmatprep.subr.bf16.mxu0 %v529_v0 }
  0x19   :  { %483 = vmatprep.subr.bf16.mxu1 %v529_v0 }
  0x1c   :  { %484 = vmatpush3.bf16.msra.mxu1 %v521_v12 }
  0x1d   :  { %485 = vmatprep.subr.bf16.mxu1 %v529_v0 }
  0x20   :  { %486 = vmatpush3.bf16.msra.mxu1 %v522_v13 }
  0xdd   :  { %v105_v17 = vpop.f32.mrb[0].mxu0 }
  0xde   :  { %v106_v18 = vadd.f32 %v418_v16, %v105_v17  ;;  %v469_v19 = vpop.f32.mrb[1].mxu0 }
  0xdf   :  { %v108_v20 = vpop.f32.mrb[2].mxu0 }
  0xe0   :  { %v109_v21 = vadd.f32 %v418_v16, %v108_v20  ;;  %v470_v22 = vpop.f32.mrb[3].mxu0  ;;  %v112_v23 = vmax.f32 %v106_v18, 0.0 }
  0xe2   :  { %v113_v24 = vmax.f32 %v109_v21, 0.0 }
  0xe4   :  { %v114_v25 = vpack.c.bf16 %v113_v24, %v112_v23 }
  0xe6   :  { %488 = vmatmul.mubr.bf16.vlgmr.msra.gmra.mrb[0].mxu1 %v114_v25 }
 0x1b9   :  { %v220_v29 = vpop.f32.mrb[0].mxu1 }
 0x1ba   :  { %v221_v30 = vadd.f32 %v422_v28, %v220_v29  ;;  %v489_v31 = vpop.f32.mrb[1].mxu1 }
 0x1bb   :  { %v223_v32 = vpop.f32.mrb[2].mxu1 }
 0x1bc   :  { %v224_v33 = vadd.f32 %v422_v28, %v223_v32  ;;  %v490_v34 = vpop.f32.mrb[3].mxu1  ;;  %v227_v35 = vmax.f32 %v221_v30, 0.0 }
 0x1be   :  { %v228_v36 = vmax.f32 %v224_v33, 0.0 }
 0x1c0   :  { %v229_v37 = vpack.c.bf16 %v228_v36, %v227_v35 }
 0x1c2   :  { %500 = vmatmul.mubr.msk.bf16.vlgmr.msra.gmra.mrb[4].mxu0 %vm269_vm2, %v229_v37 }
 0x1c3   :  { %507 = vmatprep.mubr.msk.bf16.mxu0 %vm530_vm0, %v529_v0  ;;  %504 = vmatpush3.bf16.msra.mxu0 %v527_v38 }
 0x1c4   :  { %505 = vmatprep.subr.bf16.mxu0 %v529_v0 }
 0x1c7   :  { %506 = vmatpush3.bf16.msra.mxu0 %v528_v39 }
 0x295   :  { %v307_v41 = vpop.f32.mrb[4].mxu0 }
 0x296   :  { %v308_v42 = vadd.f32 %v431_v40, %v307_v41  ;;  %v501_v43 = vpop.f32.mrb[5].mxu0 }
 0x297   :  { %v310_v44 = vpop.f32.mrb[6].mxu0 }
 0x298   :  { %v311_v45 = vadd.f32 %v431_v40, %v310_v44  ;;  %v502_v46 = vpop.f32.mrb[7].mxu0  ;;  %v314_v47 = vmax.f32 %v308_v42, 0.0 }
 0x29a   :  { %v315_v48 = vmax.f32 %v311_v45, 0.0 }
 0x29c   :  { %v316_v49 = vpack.c.bf16 %v315_v48, %v314_v47 }
 0x29e   :  { %508 = vmatmul.mubr.msk.bf16.vlgmr.msra.gmra.mrb[8].mxu0 %vm67_vm1, %v316_v49 }
 0x371   :  { %v377_v52 = vpop.f32.mrb[8].mxu0 }
 0x372   :  { %v378_v53 = vadd.f32 %v437_v51, %v377_v52  ;;  %v509_v54 = vpop.f32.mrb[9].mxu0 }
 0x373   :  { %v380_v55 = vpop.f32.mrb[10].mxu0 }
 0x374   :  { %v384_v57 = vmax.f32 %v378_v53, 0.0  ;;  %v381_v58 = vadd.f32 %v437_v51, %v380_v55  ;;  %v510_v59 = vpop.f32.mrb[11].mxu0 }
 0x376   :  { %v385_v60 = vmax.f32 %v381_v58, 0.0  ;;  %v393_v61 = vmul.f32 %v441_v56, %v384_v57 }
 0x378   :  { %v396_v62 = vsel %vm395_vm3, %v393_v61, 0.0  ;;  %v394_v63 = vmul.f32 %v441_v56, %v385_v60 }
 0x379   :  { %397 = vadd.xlane.f32.xlu0 %v396_v62 }
 0x37a   :  { %v399_v0 = vsel %vm395_vm3, %v394_v63, 0.0 }
 0x37d   :  { %400 = vadd.xlane.f32.xlu0 %v399_v0 }
 0x406   :  { %v398_v2 = vpop.xlane.xlu0 %397 }
 0x407   :  { %v409_v3 = vadd.f32 %v442_v1, %v398_v2 }
 0x409   :  { %412 = vst.msk [vmem:[%s706_s11] sm:$0xff] %vm411_vm4, %v409_v3 }
 0x40a   :  { %v401_v4 = vpop.xlane.xlu0 %400 }
 0x40b   :  { %v410_v5 = vadd.f32 %v442_v1, %v401_v4 }
 0x40d   :  { %413 = vst.msk [vmem:[%s706_s11 + $0x8] sm:$0xff] %vm411_vm4, %v410_v5 }

</bundles_post_ra>
